<compile_context>
chip_gen: v7x
topology: tpu7x:2x2x1
jax: 0.10.0
libtpu: 0.0.40
codegen_flags: <defaults>
</compile_context>

<pallas_src>
import jax
import jax.numpy as jnp
from jax.experimental import pallas as pl
from jax.experimental.pallas import tpu as pltpu


def _round_up(n, m):
    return pl.cdiv(n, m) * m


def dqn_kernel(x_ref, w1_ref, b1_ref, w2_ref, b2_ref, out_ref):
    # Cast activations at the dot boundary (VPU cast, hidden under the MXU work).
    x = x_ref[...].astype(w1_ref.dtype)
    # fc1: (TB, IN) @ (IN, H) -> f32 accumulator on the MXU.
    h = jnp.dot(x, w1_ref[...], preferred_element_type=jnp.float32)
    # Bias-add + ReLU on the f32 accumulator (biases kept in f32).
    h = jnp.maximum(h + b1_ref[...], 0.0)
    # fc2: single cast of the hidden at the second dot boundary, f32 accumulation.
    o = jnp.dot(h.astype(w2_ref.dtype), w2_ref[...],
                preferred_element_type=jnp.float32)
    out_ref[...] = (o + b2_ref[...]).astype(out_ref.dtype)


def prepare_params(w1, b1, w2, b2, compute_dtype=jnp.bfloat16):
    """One-time weight preparation: cast weights to the MXU compute dtype,
    keep biases in f32 (added on the f32 accumulator)."""
    return (w1.astype(compute_dtype), b1.astype(jnp.float32),
            w2.astype(compute_dtype), b2.astype(jnp.float32))


def dqn_forward(x, params, *, block_batch=1024):
    w1, b1, w2, b2 = params
    B, IN = x.shape
    H = w1.shape[1]
    A = w2.shape[1]

    # Batch tile: multiple of 8 sublanes, capped by the requested block size.
    TB = min(block_batch, _round_up(B, 8))
    TB = _round_up(TB, 8)
    # v7x has 2 TensorCores; megacore sharding of the "parallel" axis needs >= 2
    # grid steps.  Splitting costs ~0.35 us/step, so only bother for larger B
    # (on single-TC v5e/v6e this extra step is noise).
    if B >= 512 and pl.cdiv(B, TB) < 2:
        TB = _round_up(pl.cdiv(B, 2), 8)
    B_PAD = _round_up(B, TB)

    # Only the batch dim ever needs padding (and only when B % TB != 0).
    x_p = x if B_PAD == B else jnp.pad(x, ((0, B_PAD - B), (0, 0)))

    grid = (B_PAD // TB,)

    out_p = pl.pallas_call(
        dqn_kernel,
        out_shape=jax.ShapeDtypeStruct((B_PAD, A), x.dtype),
        grid_spec=pl.GridSpec(
            grid=grid,
            in_specs=[
                # Streamed, double-buffered per batch tile.
                pl.BlockSpec((TB, IN), lambda i: (i, 0)),
                # VMEM-resident across all grid steps (block index never changes).
                pl.BlockSpec((IN, H), lambda i: (0, 0)),
                pl.BlockSpec((1, H), lambda i: (0, 0)),
                pl.BlockSpec((H, A), lambda i: (0, 0)),
                pl.BlockSpec((1, A), lambda i: (0, 0)),
            ],
            # Narrow (A-wide) but tiny output writeback; block last dim == full
            # array last dim, so this is legal and avoids the 32x padded slab.
            out_specs=pl.BlockSpec((TB, A), lambda i: (i, 0)),
        ),
        compiler_params=pltpu.CompilerParams(
            dimension_semantics=("parallel",),   # batch tiles are independent
        ),
    )(x_p, w1, b1, w2, b2)

    # Strip batch padding (no-op slice when B_PAD == B).
    return out_p if B_PAD == B else out_p[:B]


def init_params(key, num_inputs, hidden_size, num_actions):
    # PyTorch nn.Linear default init: U(-1/sqrt(fan_in), 1/sqrt(fan_in))
    k1, k2, k3, k4 = jax.random.split(key, 4)
    bound1 = 1.0 / jnp.sqrt(num_inputs)
    bound2 = 1.0 / jnp.sqrt(hidden_size)
    w1 = jax.random.uniform(k1, (num_inputs, hidden_size), jnp.float32,
                            -bound1, bound1)
    b1 = jax.random.uniform(k2, (1, hidden_size), jnp.float32, -bound1, bound1)
    w2 = jax.random.uniform(k3, (hidden_size, num_actions), jnp.float32,
                            -bound2, bound2)
    b2 = jax.random.uniform(k4, (1, num_actions), jnp.float32, -bound2, bound2)
    return w1, b1, w2, b2


if __name__ == "__main__":
    batch = 256          # observation batch
    num_inputs = 16      # observation dim
    hidden_size = 32
    num_actions = 4      # action_space.n

    key = jax.random.PRNGKey(0)
    kx, kp = jax.random.split(key)
    x = jax.random.normal(kx, (batch, num_inputs), jnp.float32)
    w1, b1, w2, b2 = init_params(kp, num_inputs, hidden_size, num_actions)

    # One-time weight prep (bf16 weights, f32 biases) -- off the hot path.
    params = prepare_params(w1, b1, w2, b2)

    out = dqn_forward(x, params)
    out = jax.block_until_ready(out)

    # Reference check in plain JAX (f32). The kernel uses bf16 weights and casts
    # x to bf16 in-kernel with f32 accumulation, so tolerance is loosened.
    ref = jnp.maximum(x @ w1 + b1, 0.0) @ w2 + b2
    assert out.shape == (batch, num_actions)
    assert jnp.allclose(out, ref, atol=5e-2, rtol=5e-2), float(
        jnp.max(jnp.abs(out - ref)))

    print("KERNEL_OK")
</pallas_src>

<mosaic_0001>
module attributes {stable_mosaic.version = 11 : i64} {
  func.func @dqn_kernel(%arg0: i32, %arg1: memref<256x16xf32, #tpu.memory_space<vmem>>, %arg2: memref<16x32xbf16, #tpu.memory_space<vmem>>, %arg3: memref<1x32xf32, #tpu.memory_space<vmem>>, %arg4: memref<32x4xbf16, #tpu.memory_space<vmem>>, %arg5: memref<1x4xf32, #tpu.memory_space<vmem>>, %arg6: memref<256x4xf32, #tpu.memory_space<vmem>>) attributes {dimension_semantics = [#tpu.dimension_semantics<parallel>], iteration_bounds = array<i64: 1>, scalar_prefetch = 0 : i64, scratch_operands = 0 : i64, tpu.core_type = #tpu.core_type<tc>, window_params = [{transform_indices = @transform_0, window_bounds = array<i64: 256, 16>}, {pipeline_mode = #tpu.pipeline_mode<synchronous>, transform_indices = @transform_1, window_bounds = array<i64: 16, 32>}, {pipeline_mode = #tpu.pipeline_mode<synchronous>, transform_indices = @transform_2, window_bounds = array<i64: 1, 32>}, {pipeline_mode = #tpu.pipeline_mode<synchronous>, transform_indices = @transform_3, window_bounds = array<i64: 32, 4>}, {pipeline_mode = #tpu.pipeline_mode<synchronous>, transform_indices = @transform_4, window_bounds = array<i64: 1, 4>}, {transform_indices = @transform_5, window_bounds = array<i64: 256, 4>}]} {
    %c0 = arith.constant 0 : index
    %c0_0 = arith.constant 0 : index
    %0 = vector.load %arg1[%c0, %c0_0] : memref<256x16xf32, #tpu.memory_space<vmem>>, vector<256x16xf32>
    %1 = arith.truncf %0 : vector<256x16xf32> to vector<256x16xbf16>
    %c0_1 = arith.constant 0 : index
    %c0_2 = arith.constant 0 : index
    %2 = vector.load %arg2[%c0_1, %c0_2] : memref<16x32xbf16, #tpu.memory_space<vmem>>, vector<16x32xbf16>
    %cst = arith.constant dense<0.000000e+00> : vector<256x32xf32>
    %3 = tpu.matmul %1, %2, %cst {dimension_numbers = #tpu.dot_dimension_numbers<[1], [0], [0], [1], [0, 0, 1, 1], [], []>} : vector<256x16xbf16>, vector<16x32xbf16>, vector<256x32xf32> -> vector<256x32xf32>
    %c0_3 = arith.constant 0 : index
    %c0_4 = arith.constant 0 : index
    %4 = vector.load %arg3[%c0_3, %c0_4] : memref<1x32xf32, #tpu.memory_space<vmem>>, vector<1x32xf32>
    %5 = vector.broadcast %4 : vector<1x32xf32> to vector<256x32xf32>
    %6 = arith.addf %3, %5 : vector<256x32xf32>
    %cst_5 = arith.constant 0.000000e+00 : f32
    %7 = vector.broadcast %cst_5 : f32 to vector<256x32xf32>
    %8 = arith.maximumf %6, %7 : vector<256x32xf32>
    %9 = arith.truncf %8 : vector<256x32xf32> to vector<256x32xbf16>
    %c0_6 = arith.constant 0 : index
    %c0_7 = arith.constant 0 : index
    %10 = vector.load %arg4[%c0_6, %c0_7] : memref<32x4xbf16, #tpu.memory_space<vmem>>, vector<32x4xbf16>
    %cst_8 = arith.constant dense<0.000000e+00> : vector<256x4xf32>
    %11 = tpu.matmul %9, %10, %cst_8 {dimension_numbers = #tpu.dot_dimension_numbers<[1], [0], [0], [1], [0, 0, 1, 1], [], []>} : vector<256x32xbf16>, vector<32x4xbf16>, vector<256x4xf32> -> vector<256x4xf32>
    %c0_9 = arith.constant 0 : index
    %c0_10 = arith.constant 0 : index
    %12 = vector.load %arg5[%c0_9, %c0_10] : memref<1x4xf32, #tpu.memory_space<vmem>>, vector<1x4xf32>
    %13 = vector.broadcast %12 : vector<1x4xf32> to vector<256x4xf32>
    %14 = arith.addf %11, %13 : vector<256x4xf32>
    %c0_11 = arith.constant 0 : index
    %c0_12 = arith.constant 0 : index
    %15 = vector.load %arg6[%c0_11, %c0_12] : memref<256x4xf32, #tpu.memory_space<vmem>>, vector<256x4xf32>
    tpu.vector_store %arg6[%c0_11, %c0_12], %14 {strides = array<i32>} : memref<256x4xf32, #tpu.memory_space<vmem>>, vector<256x4xf32>,
    return
  }
  func.func @transform_0(%arg0: i32) -> (i32, i32) {
    %c0_i32 = arith.constant 0 : i32
    %c0_i32_0 = arith.constant 0 : i32
    return %arg0, %c0_i32 : i32, i32
  }
  func.func @transform_1(%arg0: i32) -> (i32, i32) {
    %c0_i32 = arith.constant 0 : i32
    %c0_i32_0 = arith.constant 0 : i32
    %c0_i32_1 = arith.constant 0 : i32
    return %c0_i32, %c0_i32_0 : i32, i32
  }
  func.func @transform_2(%arg0: i32) -> (i32, i32) {
    %c0_i32 = arith.constant 0 : i32
    %c0_i32_0 = arith.constant 0 : i32
    %c0_i32_1 = arith.constant 0 : i32
    return %c0_i32, %c0_i32_0 : i32, i32
  }
  func.func @transform_3(%arg0: i32) -> (i32, i32) {
    %c0_i32 = arith.constant 0 : i32
    %c0_i32_0 = arith.constant 0 : i32
    %c0_i32_1 = arith.constant 0 : i32
    return %c0_i32, %c0_i32_0 : i32, i32
  }
  func.func @transform_4(%arg0: i32) -> (i32, i32) {
    %c0_i32 = arith.constant 0 : i32
    %c0_i32_0 = arith.constant 0 : i32
    %c0_i32_1 = arith.constant 0 : i32
    return %c0_i32, %c0_i32_0 : i32, i32
  }
  func.func @transform_5(%arg0: i32) -> (i32, i32) {
    %c0_i32 = arith.constant 0 : i32
    %c0_i32_0 = arith.constant 0 : i32
    return %arg0, %c0_i32 : i32, i32
  }
}

</mosaic_0001>

<bundles_post_ra>
// kernel: tpu_custom_call.1
= control target key start
LH: loop header
LB: loop body
LE: loop exit
PB: predicated region body
PF: predicated region fallthrough
CT: control target
= control target key end

     0   :  { %vm84_vm0 = vcmask 130048   ;;  %vm365_vm1 = vcmask 261120   ;;  %vm575_vm2 = vcmask 31744   ;;  %s1126_s1 = inlined_call_operand.vmem [shape: bf16[16,32], index: 1, kind: input, shape index: {}]   ;;  %s1127_s0 = inlined_call_operand.vmem [shape: f32[256,16], index: 0, kind: input, shape index: {}]   ;;  %s1128_s3 = inlined_call_operand.vmem [shape: bf16[32,4], index: 3, kind: input, shape index: {}]   ;;  %s1129_s2 = inlined_call_operand.vmem [shape: f32[1,32], index: 2, kind: input, shape index: {}]   ;;  %s1130_s4 = inlined_call_operand.vmem [shape: f32[1,4], index: 4, kind: input, shape index: {}]   ;;  %s1131_s5 = inlined_call_operand.vmem [shape: f32[256,4], index: 5, kind: output, shape index: {}]  }
   0x1   :  { %v754_v0 = vld [vmem:[%s1126_s1] sm:$0xff]   ;;  %v22_v2 = vld [vmem:[%s1127_s0 + $0x8] sm:$0xff]  ;;  %v23_v3 = vld [vmem:[%s1127_s0 + $0x10] sm:$0xff] }
   0x2   :  { %v21_v1 = vld [vmem:[%s1127_s0] sm:$0xff]  ;;  %684 = vmatprep.subr.bf16.mxu0 %v754_v0  ;;  %v24_v5 = vld [vmem:[%s1127_s0 + $0x18] sm:$0xff]  ;;  %v26_v7 = vld [vmem:[%s1127_s0 + $0x28] sm:$0xff] }
   0x3   :  { %v53_v4 = vpack.c.bf16 %v22_v2, %v21_v1  ;;  %v25_v6 = vld [vmem:[%s1127_s0 + $0x20] sm:$0xff]  ;;  %685 = vmatpush3.bf16.msra.mxu0 %v754_v0  ;;  %v54_v8 = vpack.c.bf16 %v24_v5, %v23_v3  ;;  %v27_v10 = vld [vmem:[%s1127_s0 + $0x30] sm:$0xff]  ;;  %v28_v11 = vld [vmem:[%s1127_s0 + $0x38] sm:$0xff] }
   0x4   :  { %v55_v9 = vpack.c.bf16 %v26_v7, %v25_v6  ;;  %v29_v12 = vld [vmem:[%s1127_s0 + $0x40] sm:$0xff]  ;;  %v30_v13 = vld [vmem:[%s1127_s0 + $0x48] sm:$0xff]  ;;  %v56_v14 = vpack.c.bf16 %v28_v11, %v27_v10  ;;  %v31_v16 = vld [vmem:[%s1127_s0 + $0x50] sm:$0xff] }
   0x5   :  { %686 = vmatprep.mubr.msk.bf16.mxu0 %vm84_vm0, %v53_v4  ;;  %v57_v15 = vpack.c.bf16 %v30_v13, %v29_v12  ;;  %v32_v17 = vld [vmem:[%s1127_s0 + $0x58] sm:$0xff]  ;;  %v33_v18 = vld [vmem:[%s1127_s0 + $0x60] sm:$0xff]  ;;  %v34_v19 = vld [vmem:[%s1127_s0 + $0x68] sm:$0xff] }
   0x6   :  { %687 = vmatmul.mubr.msk.bf16.vlgmr.msra.gmra.mrb[0].mxu0 %vm84_vm0, %v54_v8  ;;  %v58_v20 = vpack.c.bf16 %v32_v17, %v31_v16  ;;  %v59_v21 = vpack.c.bf16 %v34_v19, %v33_v18  ;;  %v35_v22 = vld [vmem:[%s1127_s0 + $0x70] sm:$0xff]  ;;  %v36_v23 = vld [vmem:[%s1127_s0 + $0x78] sm:$0xff]  ;;  %v37_v24 = vld [vmem:[%s1127_s0 + $0x80] sm:$0xff] }
   0x7   :  { %690 = vmatprep.mubr.msk.bf16.mxu0 %vm84_vm0, %v55_v9  ;;  %v38_v25 = vld [vmem:[%s1127_s0 + $0x88] sm:$0xff]  ;;  %v60_v26 = vpack.c.bf16 %v36_v23, %v35_v22  ;;  %v39_v28 = vld [vmem:[%s1127_s0 + $0x90] sm:$0xff]  ;;  %v40_v29 = vld [vmem:[%s1127_s0 + $0x98] sm:$0xff] }
   0x8   :  { %v61_v27 = vpack.c.bf16 %v38_v25, %v37_v24  ;;  %v41_v30 = vld [vmem:[%s1127_s0 + $0xa0] sm:$0xff]  ;;  %v42_v31 = vld [vmem:[%s1127_s0 + $0xa8] sm:$0xff]  ;;  %v62_v32 = vpack.c.bf16 %v40_v29, %v39_v28  ;;  %v43_v34 = vld [vmem:[%s1127_s0 + $0xb0] sm:$0xff] }
   0x9   :  { %v63_v33 = vpack.c.bf16 %v42_v31, %v41_v30  ;;  %v44_v35 = vld [vmem:[%s1127_s0 + $0xb8] sm:$0xff]  ;;  %v45_v36 = vld [vmem:[%s1127_s0 + $0xc0] sm:$0xff]  ;;  %v46_v37 = vld [vmem:[%s1127_s0 + $0xc8] sm:$0xff] }
   0xa   :  { %v64_v38 = vpack.c.bf16 %v44_v35, %v43_v34  ;;  %v65_v39 = vpack.c.bf16 %v46_v37, %v45_v36  ;;  %v47_v40 = vld [vmem:[%s1127_s0 + $0xd0] sm:$0xff]  ;;  %v48_v41 = vld [vmem:[%s1127_s0 + $0xd8] sm:$0xff]  ;;  %v49_v42 = vld [vmem:[%s1127_s0 + $0xe0] sm:$0xff] }
   0xb   :  { %v50_v43 = vld [vmem:[%s1127_s0 + $0xe8] sm:$0xff]  ;;  %v66_v44 = vpack.c.bf16 %v48_v41, %v47_v40  ;;  %v51_v46 = vld [vmem:[%s1127_s0 + $0xf0] sm:$0xff]  ;;  %v52_v47 = vld [vmem:[%s1127_s0 + $0xf8] sm:$0xff] }
   0xc   :  { %v67_v45 = vpack.c.bf16 %v50_v43, %v49_v42  ;;  %v68_v48 = vpack.c.bf16 %v52_v47, %v51_v46  ;;  %v755_v49 = vld [vmem:[%s1128_s3] sm:$0xff]   ;;  %v756_v50 = vld [vmem:[%s1128_s3 + $0x8] sm:$0xff]  }
   0xd   :  { %718 = vmatprep.subr.bf16.mxu1 %v755_v49  ;;  %v911_v51 = vld [vmem:[%s1129_s2] ss:$0 sm:$0xff] }
   0xe   :  { %691 = vmatmul.mubr.msk.bf16.gmra.mrb[4].mxu0 %vm84_vm0, %v56_v14  ;;  %719 = vmatpush3.bf16.msra.mxu1 %v755_v49 }
   0xf   :  { %694 = vmatprep.mubr.msk.bf16.mxu0 %vm84_vm0, %v57_v15  ;;  %720 = vmatprep.subr.bf16.mxu1 %v756_v50 }
  0x12   :  { %721 = vmatpush3.bf16.msra.mxu1 %v756_v50 }
  0x16   :  { %695 = vmatmul.mubr.msk.bf16.gmra.mrb[8].mxu0 %vm84_vm0, %v58_v20 }
  0x17   :  { %698 = vmatprep.mubr.msk.bf16.mxu0 %vm84_vm0, %v59_v21 }
  0x1e   :  { %699 = vmatmul.mubr.msk.bf16.gmra.mrb[12].mxu0 %vm84_vm0, %v60_v26 }
  0x1f   :  { %702 = vmatprep.mubr.msk.bf16.mxu0 %vm84_vm0, %v61_v27 }
  0x26   :  { %703 = vmatmul.mubr.msk.bf16.gmra.mrb[16].mxu0 %vm84_vm0, %v62_v32 }
  0x27   :  { %706 = vmatprep.mubr.msk.bf16.mxu0 %vm84_vm0, %v63_v33 }
  0x2e   :  { %707 = vmatmul.mubr.msk.bf16.gmra.mrb[20].mxu0 %vm84_vm0, %v64_v38 }
  0x2f   :  { %710 = vmatprep.mubr.msk.bf16.mxu0 %vm84_vm0, %v65_v39 }
  0x36   :  { %711 = vmatmul.mubr.msk.bf16.gmra.mrb[24].mxu0 %vm84_vm0, %v66_v44 }
  0x37   :  { %714 = vmatprep.mubr.msk.bf16.mxu0 %vm84_vm0, %v67_v45 }
  0x3e   :  { %715 = vmatmul.mubr.msk.bf16.gmra.mrb[28].mxu0 %vm84_vm0, %v68_v48 }
  0xd9   :  { %v688_v52 = vpop.f32.mrb[0].mxu0 }
  0xda   :  { %v176_v53 = vadd.f32 %v688_v52, %v911_v51  ;;  %v167_v54 = vpop.f32.mrb[1].mxu0 }
  0xdb   :  { %v168_v55 = vadd.f32 %v911_v51, %v167_v54  ;;  %v689_v56 = vpop.f32.mrb[2].mxu0 }
  0xdc   :  { %v179_v57 = vadd.f32 %v689_v56, %v911_v51  ;;  %v170_v58 = vpop.f32.mrb[3].mxu0  ;;  %v296_v60 = vmax.f32 %v176_v53, 0.0 }
  0xdd   :  { %v171_v59 = vadd.f32 %v911_v51, %v170_v58  ;;  %v294_v62 = vmax.f32 %v168_v55, 0.0 }
  0xde   :  { %v297_v61 = vmax.f32 %v179_v57, 0.0 }
  0xdf   :  { %v295_v63 = vmax.f32 %v171_v59, 0.0 }
  0xe0   :  { %v327_v0 = vpack.c.bf16 %v297_v61, %v296_v60 }
  0xe1   :  { %v692_v1 = vpop.f32.mrb[4].mxu0  ;;  %v326_v2 = vpack.c.bf16 %v295_v63, %v294_v62 }
  0xe2   :  { %v192_v3 = vadd.f32 %v692_v1, %v911_v51  ;;  %v183_v4 = vpop.f32.mrb[5].mxu0 }
  0xe3   :  { %v184_v5 = vadd.f32 %v911_v51, %v183_v4  ;;  %v693_v6 = vpop.f32.mrb[6].mxu0  ;;  %722 = vmatprep.mubr.msk.bf16.mxu1 %vm365_vm1, %v326_v2 }
  0xe4   :  { %v195_v7 = vadd.f32 %v693_v6, %v911_v51  ;;  %v186_v8 = vpop.f32.mrb[7].mxu0  ;;  %723 = vmatmul.mubr.msk.bf16.vlgmr.msra.gmra.mrb[0].mxu1 %vm365_vm1, %v327_v0  ;;  %v300_v10 = vmax.f32 %v192_v3, 0.0 }
  0xe5   :  { %v187_v9 = vadd.f32 %v911_v51, %v186_v8  ;;  %v298_v12 = vmax.f32 %v184_v5, 0.0 }
  0xe6   :  { %v301_v11 = vmax.f32 %v195_v7, 0.0 }
  0xe7   :  { %v299_v13 = vmax.f32 %v187_v9, 0.0 }
  0xe8   :  { %v329_v14 = vpack.c.bf16 %v301_v11, %v300_v10 }
  0xe9   :  { %v328_v15 = vpack.c.bf16 %v299_v13, %v298_v12  ;;  %v696_v16 = vpop.f32.mrb[8].mxu0 }
  0xea   :  { %v208_v17 = vadd.f32 %v696_v16, %v911_v51  ;;  %v199_v18 = vpop.f32.mrb[9].mxu0 }
  0xeb   :  { %v200_v19 = vadd.f32 %v911_v51, %v199_v18  ;;  %v697_v20 = vpop.f32.mrb[10].mxu0  ;;  %726 = vmatprep.mubr.msk.bf16.mxu1 %vm365_vm1, %v328_v15 }
  0xec   :  { %v211_v21 = vadd.f32 %v697_v20, %v911_v51  ;;  %v202_v22 = vpop.f32.mrb[11].mxu0  ;;  %727 = vmatmul.mubr.msk.bf16.gmra.mrb[4].mxu1 %vm365_vm1, %v329_v14  ;;  %v304_v24 = vmax.f32 %v208_v17, 0.0 }
  0xed   :  { %v203_v23 = vadd.f32 %v911_v51, %v202_v22  ;;  %v302_v26 = vmax.f32 %v200_v19, 0.0 }
  0xee   :  { %v305_v25 = vmax.f32 %v211_v21, 0.0 }
  0xef   :  { %v303_v27 = vmax.f32 %v203_v23, 0.0 }
  0xf0   :  { %v331_v28 = vpack.c.bf16 %v305_v25, %v304_v24 }
  0xf1   :  { %v330_v29 = vpack.c.bf16 %v303_v27, %v302_v26  ;;  %v700_v30 = vpop.f32.mrb[12].mxu0 }
  0xf2   :  { %v224_v31 = vadd.f32 %v700_v30, %v911_v51  ;;  %v215_v32 = vpop.f32.mrb[13].mxu0 }
  0xf3   :  { %v216_v33 = vadd.f32 %v911_v51, %v215_v32  ;;  %v701_v34 = vpop.f32.mrb[14].mxu0  ;;  %730 = vmatprep.mubr.msk.bf16.mxu1 %vm365_vm1, %v330_v29 }
  0xf4   :  { %v227_v35 = vadd.f32 %v701_v34, %v911_v51  ;;  %v218_v36 = vpop.f32.mrb[15].mxu0  ;;  %731 = vmatmul.mubr.msk.bf16.gmra.mrb[8].mxu1 %vm365_vm1, %v331_v28  ;;  %v308_v38 = vmax.f32 %v224_v31, 0.0 }
  0xf5   :  { %v219_v37 = vadd.f32 %v911_v51, %v218_v36  ;;  %v306_v40 = vmax.f32 %v216_v33, 0.0 }
  0xf6   :  { %v309_v39 = vmax.f32 %v227_v35, 0.0 }
  0xf7   :  { %v307_v41 = vmax.f32 %v219_v37, 0.0  ;;  %v964_v37 = vld [vmem:[%s1130_s4] ss:$0 sm:$0xff] }
  0xf8   :  { %v333_v42 = vpack.c.bf16 %v309_v39, %v308_v38 }
  0xf9   :  { %v332_v43 = vpack.c.bf16 %v307_v41, %v306_v40  ;;  %v704_v44 = vpop.f32.mrb[16].mxu0 }
  0xfa   :  { %v240_v45 = vadd.f32 %v704_v44, %v911_v51  ;;  %v231_v46 = vpop.f32.mrb[17].mxu0 }
  0xfb   :  { %v232_v47 = vadd.f32 %v911_v51, %v231_v46  ;;  %v705_v48 = vpop.f32.mrb[18].mxu0  ;;  %734 = vmatprep.mubr.msk.bf16.mxu1 %vm365_vm1, %v332_v43 }
  0xfc   :  { %v243_v49 = vadd.f32 %v705_v48, %v911_v51  ;;  %v234_v50 = vpop.f32.mrb[19].mxu0  ;;  %735 = vmatmul.mubr.msk.bf16.gmra.mrb[12].mxu1 %vm365_vm1, %v333_v42  ;;  %v312_v53 = vmax.f32 %v240_v45, 0.0 }
  0xfd   :  { %v235_v52 = vadd.f32 %v911_v51, %v234_v50  ;;  %v310_v55 = vmax.f32 %v232_v47, 0.0 }
  0xfe   :  { %v313_v54 = vmax.f32 %v243_v49, 0.0 }
  0xff   :  { %v311_v56 = vmax.f32 %v235_v52, 0.0 }
 0x100   :  { %v335_v57 = vpack.c.bf16 %v313_v54, %v312_v53 }
 0x101   :  { %v334_v58 = vpack.c.bf16 %v311_v56, %v310_v55  ;;  %v708_v59 = vpop.f32.mrb[20].mxu0 }
 0x102   :  { %v256_v60 = vadd.f32 %v708_v59, %v911_v51  ;;  %v247_v61 = vpop.f32.mrb[21].mxu0 }
 0x103   :  { %v248_v62 = vadd.f32 %v911_v51, %v247_v61  ;;  %v709_v63 = vpop.f32.mrb[22].mxu0  ;;  %738 = vmatprep.mubr.msk.bf16.mxu1 %vm365_vm1, %v334_v58 }
 0x104   :  { %v259_v0 = vadd.f32 %v709_v63, %v911_v51  ;;  %v250_v1 = vpop.f32.mrb[23].mxu0  ;;  %739 = vmatmul.mubr.msk.bf16.gmra.mrb[16].mxu1 %vm365_vm1, %v335_v57  ;;  %v316_v3 = vmax.f32 %v256_v60, 0.0 }
 0x105   :  { %v251_v2 = vadd.f32 %v911_v51, %v250_v1  ;;  %v314_v5 = vmax.f32 %v248_v62, 0.0 }
 0x106   :  { %v317_v4 = vmax.f32 %v259_v0, 0.0 }
 0x107   :  { %v315_v6 = vmax.f32 %v251_v2, 0.0 }
 0x108   :  { %v337_v7 = vpack.c.bf16 %v317_v4, %v316_v3 }
 0x109   :  { %v336_v8 = vpack.c.bf16 %v315_v6, %v314_v5  ;;  %v712_v9 = vpop.f32.mrb[24].mxu0 }
 0x10a   :  { %v272_v10 = vadd.f32 %v712_v9, %v911_v51  ;;  %v263_v11 = vpop.f32.mrb[25].mxu0 }
 0x10b   :  { %v264_v12 = vadd.f32 %v911_v51, %v263_v11  ;;  %v713_v13 = vpop.f32.mrb[26].mxu0  ;;  %742 = vmatprep.mubr.msk.bf16.mxu1 %vm365_vm1, %v336_v8 }
 0x10c   :  { %v275_v14 = vadd.f32 %v713_v13, %v911_v51  ;;  %v266_v15 = vpop.f32.mrb[27].mxu0  ;;  %743 = vmatmul.mubr.msk.bf16.gmra.mrb[20].mxu1 %vm365_vm1, %v337_v7  ;;  %v320_v17 = vmax.f32 %v272_v10, 0.0 }
 0x10d   :  { %v267_v16 = vadd.f32 %v911_v51, %v266_v15  ;;  %v318_v19 = vmax.f32 %v264_v12, 0.0 }
 0x10e   :  { %v321_v18 = vmax.f32 %v275_v14, 0.0 }
 0x10f   :  { %v319_v20 = vmax.f32 %v267_v16, 0.0 }
 0x110   :  { %v339_v21 = vpack.c.bf16 %v321_v18, %v320_v17 }
 0x111   :  { %v338_v22 = vpack.c.bf16 %v319_v20, %v318_v19  ;;  %v716_v23 = vpop.f32.mrb[28].mxu0 }
 0x112   :  { %v288_v24 = vadd.f32 %v716_v23, %v911_v51  ;;  %v279_v25 = vpop.f32.mrb[29].mxu0 }
 0x113   :  { %v280_v26 = vadd.f32 %v911_v51, %v279_v25  ;;  %v717_v27 = vpop.f32.mrb[30].mxu0  ;;  %746 = vmatprep.mubr.msk.bf16.mxu1 %vm365_vm1, %v338_v22 }
 0x114   :  { %v291_v28 = vadd.f32 %v717_v27, %v911_v51  ;;  %v282_v29 = vpop.f32.mrb[31].mxu0  ;;  %747 = vmatmul.mubr.msk.bf16.gmra.mrb[24].mxu1 %vm365_vm1, %v339_v21  ;;  %v324_v31 = vmax.f32 %v288_v24, 0.0 }
 0x115   :  { %v283_v30 = vadd.f32 %v911_v51, %v282_v29  ;;  %v322_v33 = vmax.f32 %v280_v26, 0.0 }
 0x116   :  { %v325_v32 = vmax.f32 %v291_v28, 0.0 }
 0x117   :  { %v323_v34 = vmax.f32 %v283_v30, 0.0 }
 0x118   :  { %v341_v35 = vpack.c.bf16 %v325_v32, %v324_v31 }
 0x119   :  { %v340_v36 = vpack.c.bf16 %v323_v34, %v322_v33 }
 0x11b   :  { %750 = vmatprep.mubr.msk.bf16.mxu1 %vm365_vm1, %v340_v36 }
 0x11c   :  { %751 = vmatmul.mubr.msk.bf16.gmra.mrb[28].mxu1 %vm365_vm1, %v341_v35 }
 0x1b7   :  { %v724_v38 = vpop.f32.mrb[0].mxu1 }
 0x1b8   :  { %v457_v39 = vadd.f32 %v724_v38, %v964_v37  ;;  %v448_v51 = vpop.f32.mrb[1].mxu1 }
 0x1b9   :  { %v449_v40 = vadd.f32 %v964_v37, %v448_v51  ;;  %v725_v41 = vpop.f32.mrb[2].mxu1 }
 0x1ba   :  { %578 = vst.msk [vmem:[%s1131_s5 + $0x10] sm:$0xff] %vm575_vm2, %v457_v39  ;;  %v460_v42 = vadd.f32 %v725_v41, %v964_v37  ;;  %v451_v43 = vpop.f32.mrb[3].mxu1 }
 0x1bb   :  { %576 = vst.msk [vmem:[%s1131_s5] sm:$0xff] %vm575_vm2, %v449_v40  ;;  %v452_v44 = vadd.f32 %v964_v37, %v451_v43 }
 0x1bc   :  { %579 = vst.msk [vmem:[%s1131_s5 + $0x18] sm:$0xff] %vm575_vm2, %v460_v42 }
 0x1bd   :  { %577 = vst.msk [vmem:[%s1131_s5 + $0x8] sm:$0xff] %vm575_vm2, %v452_v44 }
 0x1bf   :  { %v728_v45 = vpop.f32.mrb[4].mxu1 }
 0x1c0   :  { %v473_v46 = vadd.f32 %v728_v45, %v964_v37  ;;  %v464_v47 = vpop.f32.mrb[5].mxu1 }
 0x1c1   :  { %v465_v48 = vadd.f32 %v964_v37, %v464_v47  ;;  %v729_v49 = vpop.f32.mrb[6].mxu1 }
 0x1c2   :  { %582 = vst.msk [vmem:[%s1131_s5 + $0x30] sm:$0xff] %vm575_vm2, %v473_v46  ;;  %v476_v50 = vadd.f32 %v729_v49, %v964_v37  ;;  %v467_v52 = vpop.f32.mrb[7].mxu1 }
 0x1c3   :  { %580 = vst.msk [vmem:[%s1131_s5 + $0x20] sm:$0xff] %vm575_vm2, %v465_v48  ;;  %v468_v53 = vadd.f32 %v964_v37, %v467_v52 }
 0x1c4   :  { %583 = vst.msk [vmem:[%s1131_s5 + $0x38] sm:$0xff] %vm575_vm2, %v476_v50 }
 0x1c5   :  { %581 = vst.msk [vmem:[%s1131_s5 + $0x28] sm:$0xff] %vm575_vm2, %v468_v53 }
 0x1c7   :  { %v732_v54 = vpop.f32.mrb[8].mxu1 }
 0x1c8   :  { %v489_v55 = vadd.f32 %v732_v54, %v964_v37  ;;  %v480_v56 = vpop.f32.mrb[9].mxu1 }
 0x1c9   :  { %v481_v57 = vadd.f32 %v964_v37, %v480_v56  ;;  %v733_v58 = vpop.f32.mrb[10].mxu1 }
 0x1ca   :  { %586 = vst.msk [vmem:[%s1131_s5 + $0x50] sm:$0xff] %vm575_vm2, %v489_v55  ;;  %v492_v59 = vadd.f32 %v733_v58, %v964_v37  ;;  %v483_v60 = vpop.f32.mrb[11].mxu1 }
 0x1cb   :  { %584 = vst.msk [vmem:[%s1131_s5 + $0x40] sm:$0xff] %vm575_vm2, %v481_v57  ;;  %v484_v61 = vadd.f32 %v964_v37, %v483_v60 }
 0x1cc   :  { %587 = vst.msk [vmem:[%s1131_s5 + $0x58] sm:$0xff] %vm575_vm2, %v492_v59 }
 0x1cd   :  { %585 = vst.msk [vmem:[%s1131_s5 + $0x48] sm:$0xff] %vm575_vm2, %v484_v61 }
 0x1cf   :  { %v736_v62 = vpop.f32.mrb[12].mxu1 }
 0x1d0   :  { %v505_v63 = vadd.f32 %v736_v62, %v964_v37  ;;  %v496_v0 = vpop.f32.mrb[13].mxu1 }
 0x1d1   :  { %v497_v1 = vadd.f32 %v964_v37, %v496_v0  ;;  %v737_v2 = vpop.f32.mrb[14].mxu1 }
 0x1d2   :  { %590 = vst.msk [vmem:[%s1131_s5 + $0x70] sm:$0xff] %vm575_vm2, %v505_v63  ;;  %v508_v3 = vadd.f32 %v737_v2, %v964_v37  ;;  %v499_v4 = vpop.f32.mrb[15].mxu1 }
 0x1d3   :  { %588 = vst.msk [vmem:[%s1131_s5 + $0x60] sm:$0xff] %vm575_vm2, %v497_v1  ;;  %v500_v5 = vadd.f32 %v964_v37, %v499_v4 }
 0x1d4   :  { %591 = vst.msk [vmem:[%s1131_s5 + $0x78] sm:$0xff] %vm575_vm2, %v508_v3 }
 0x1d5   :  { %589 = vst.msk [vmem:[%s1131_s5 + $0x68] sm:$0xff] %vm575_vm2, %v500_v5 }
 0x1d7   :  { %v740_v6 = vpop.f32.mrb[16].mxu1 }
 0x1d8   :  { %v521_v7 = vadd.f32 %v740_v6, %v964_v37  ;;  %v512_v8 = vpop.f32.mrb[17].mxu1 }
 0x1d9   :  { %v513_v9 = vadd.f32 %v964_v37, %v512_v8  ;;  %v741_v10 = vpop.f32.mrb[18].mxu1 }
 0x1da   :  { %594 = vst.msk [vmem:[%s1131_s5 + $0x90] sm:$0xff] %vm575_vm2, %v521_v7  ;;  %v524_v11 = vadd.f32 %v741_v10, %v964_v37  ;;  %v515_v12 = vpop.f32.mrb[19].mxu1 }
 0x1db   :  { %592 = vst.msk [vmem:[%s1131_s5 + $0x80] sm:$0xff] %vm575_vm2, %v513_v9  ;;  %v516_v13 = vadd.f32 %v964_v37, %v515_v12 }
 0x1dc   :  { %595 = vst.msk [vmem:[%s1131_s5 + $0x98] sm:$0xff] %vm575_vm2, %v524_v11 }
 0x1dd   :  { %593 = vst.msk [vmem:[%s1131_s5 + $0x88] sm:$0xff] %vm575_vm2, %v516_v13 }
 0x1df   :  { %v744_v14 = vpop.f32.mrb[20].mxu1 }
 0x1e0   :  { %v537_v15 = vadd.f32 %v744_v14, %v964_v37  ;;  %v528_v16 = vpop.f32.mrb[21].mxu1 }
 0x1e1   :  { %v529_v17 = vadd.f32 %v964_v37, %v528_v16  ;;  %v745_v18 = vpop.f32.mrb[22].mxu1 }
 0x1e2   :  { %598 = vst.msk [vmem:[%s1131_s5 + $0xb0] sm:$0xff] %vm575_vm2, %v537_v15  ;;  %v540_v19 = vadd.f32 %v745_v18, %v964_v37  ;;  %v531_v20 = vpop.f32.mrb[23].mxu1 }
 0x1e3   :  { %596 = vst.msk [vmem:[%s1131_s5 + $0xa0] sm:$0xff] %vm575_vm2, %v529_v17  ;;  %v532_v21 = vadd.f32 %v964_v37, %v531_v20 }
 0x1e4   :  { %599 = vst.msk [vmem:[%s1131_s5 + $0xb8] sm:$0xff] %vm575_vm2, %v540_v19 }
 0x1e5   :  { %597 = vst.msk [vmem:[%s1131_s5 + $0xa8] sm:$0xff] %vm575_vm2, %v532_v21 }
 0x1e7   :  { %v748_v22 = vpop.f32.mrb[24].mxu1 }
 0x1e8   :  { %v553_v23 = vadd.f32 %v748_v22, %v964_v37  ;;  %v544_v24 = vpop.f32.mrb[25].mxu1 }
 0x1e9   :  { %v545_v25 = vadd.f32 %v964_v37, %v544_v24  ;;  %v749_v26 = vpop.f32.mrb[26].mxu1 }
 0x1ea   :  { %602 = vst.msk [vmem:[%s1131_s5 + $0xd0] sm:$0xff] %vm575_vm2, %v553_v23  ;;  %v556_v27 = vadd.f32 %v749_v26, %v964_v37  ;;  %v547_v28 = vpop.f32.mrb[27].mxu1 }
 0x1eb   :  { %600 = vst.msk [vmem:[%s1131_s5 + $0xc0] sm:$0xff] %vm575_vm2, %v545_v25  ;;  %v548_v29 = vadd.f32 %v964_v37, %v547_v28 }
 0x1ec   :  { %603 = vst.msk [vmem:[%s1131_s5 + $0xd8] sm:$0xff] %vm575_vm2, %v556_v27 }
 0x1ed   :  { %601 = vst.msk [vmem:[%s1131_s5 + $0xc8] sm:$0xff] %vm575_vm2, %v548_v29 }
 0x1ef   :  { %v752_v30 = vpop.f32.mrb[28].mxu1 }
 0x1f0   :  { %v569_v31 = vadd.f32 %v752_v30, %v964_v37  ;;  %v560_v32 = vpop.f32.mrb[29].mxu1 }
 0x1f1   :  { %v561_v33 = vadd.f32 %v964_v37, %v560_v32  ;;  %v753_v34 = vpop.f32.mrb[30].mxu1 }
 0x1f2   :  { %606 = vst.msk [vmem:[%s1131_s5 + $0xf0] sm:$0xff] %vm575_vm2, %v569_v31  ;;  %v572_v35 = vadd.f32 %v753_v34, %v964_v37  ;;  %v563_v36 = vpop.f32.mrb[31].mxu1 }
 0x1f3   :  { %604 = vst.msk [vmem:[%s1131_s5 + $0xe0] sm:$0xff] %vm575_vm2, %v561_v33  ;;  %v564_v38 = vadd.f32 %v964_v37, %v563_v36 }
 0x1f4   :  { %607 = vst.msk [vmem:[%s1131_s5 + $0xf8] sm:$0xff] %vm575_vm2, %v572_v35 }
 0x1f5   :  { %605 = vst.msk [vmem:[%s1131_s5 + $0xe8] sm:$0xff] %vm575_vm2, %v564_v38 }

</bundles_post_ra>
